<compile_context>
chip_gen: v5e
topology: v5e:2x2
jax: 0.10.0
libtpu: 0.0.40
codegen_flags: <defaults>
</compile_context>

<pallas_src>
import math
import functools

import jax
import jax.numpy as jnp
from jax import lax
from jax.experimental import pallas as pl
from jax.experimental.pallas import tpu as pltpu

_NEG_INF = -1e30          # large-negative instead of -inf: keeps exp/max NaN-free
_NORM_EPS = 1e-12         # matches torch F.normalize eps


def _round_up(x, mult):
    return ((x + mult - 1) // mult) * mult


def _l2_normalize(x):
    return x * lax.rsqrt(
        jnp.maximum(jnp.sum(x * x, axis=1, keepdims=True), _NORM_EPS * _NORM_EPS))


def _arcface_kernel(emb_ref, w_ref, tgt_ref, m_ref, l_ref, t_ref, *,
                    s, cos_m, sin_m, th, mm, easy_margin, ls_eps,
                    num_classes, tile_c, classes_per_split, mask_pad):
    si = pl.program_id(0)          # class-split (megacore) index
    ci = pl.program_id(2)          # class-tile index within the split

    @pl.when(ci == 0)
    def _init():
        m_ref[...] = jnp.full_like(m_ref, _NEG_INF)
        l_ref[...] = jnp.zeros_like(l_ref)
        t_ref[...] = jnp.zeros_like(t_ref)

    # Inputs are pre-L2-normalized bf16; weight tile is (E, tc) so the MXU sees
    # native (M,K)x(K,N) with the class axis lane-dense (no transpose, no rsqrt
    # in the hot loop).  f32 accumulation on the MXU.
    cosine = lax.dot_general(
        emb_ref[...], w_ref[...],
        dimension_numbers=(((1,), (0,)), ((), ())),
        preferred_element_type=jnp.float32)                        # (tb, tc) f32

    tb, tc = cosine.shape
    tgt = tgt_ref[...]                                             # (tb, 1) int32
    col0 = si * classes_per_split + ci * tile_c
    gid = lax.broadcasted_iota(jnp.int32, (tb, tc), 1) + col0
    tgt_mask = gid == tgt

    if ls_eps == 0.0:
        # Margin only affects the target column -> sqrt/where math on (tb, 1).
        # NOTE: when the target column is not in this class tile, cos_t is 0 and
        # phi_t is intentional dead compute, fully masked out by tgt_mask.
        cos_t = jnp.sum(jnp.where(tgt_mask, cosine, 0.0), axis=1, keepdims=True)
        sin_t = jnp.sqrt(jnp.clip(1.0 - cos_t * cos_t, 0.0, 1.0))
        phi_t = cos_t * cos_m - sin_t * sin_m
        if easy_margin:
            phi_t = jnp.where(cos_t > 0.0, phi_t, cos_t)
        else:
            phi_t = jnp.where(cos_t > th, phi_t, cos_t - mm)
        logits = s * jnp.where(tgt_mask, phi_t, cosine)
    else:
        # Label smoothing blends phi into every class column (full-block math).
        sine = jnp.sqrt(jnp.clip(1.0 - cosine * cosine, 0.0, 1.0))
        phi = cosine * cos_m - sine * sin_m
        if easy_margin:
            phi = jnp.where(cosine > 0.0, phi, cosine)
        else:
            phi = jnp.where(cosine > th, phi, cosine - mm)
        oh = (1.0 - ls_eps) * tgt_mask.astype(jnp.float32) + ls_eps / num_classes
        logits = s * (cosine + oh * (phi - cosine))    # fused blend (1 fewer mul)

    # hard-label target logit (target class is always a valid column)
    t_ref[...] += jnp.sum(jnp.where(tgt_mask, logits, 0.0), axis=1, keepdims=True)

    if mask_pad:   # static: only traced when padded class columns exist
        logits = jnp.where(gid < num_classes, logits, _NEG_INF)

    # ---- streaming log-sum-exp across class tiles ---------------------------
    m_prev = m_ref[...]
    m_new = jnp.maximum(m_prev, jnp.max(logits, axis=1, keepdims=True))
    l_ref[...] = (l_ref[...] * jnp.exp(m_prev - m_new)
                  + jnp.sum(jnp.exp(logits - m_new), axis=1, keepdims=True))
    m_ref[...] = m_new


def arcface_loss(embeddings, weight, targets, *,
                 s=30.0, m=0.5, ls_eps=0.0, easy_margin=False,
                 tile_b=512, tile_c=1024):
    """embeddings: (B, E) f32, weight: (C, E) f32, targets: (B,) int -> scalar loss."""
    B, E = embeddings.shape
    C, E2 = weight.shape
    assert E == E2

    cos_m = math.cos(m)
    sin_m = math.sin(m)
    th = math.cos(math.pi - m)
    mm = math.sin(math.pi - m) * m

    # ---- tile sizing: batch mult-of-8 (sublane), class mult-of-128 (lane) ----
    tile_b = _round_up(tile_b, 8)
    tile_c = _round_up(tile_c, 128)
    tb = min(tile_b, _round_up(B, 8))
    tc = min(tile_c, _round_up(C, 128))

    # VMEM fit (v7x: 64 MiB physical): shrink class tile first, then batch tile.
    def vmem_est(tb_, tc_):
        return (2 * E * tc_ * 2          # double-buffered bf16 weight tile
                + 2 * tb_ * E * 2        # double-buffered bf16 embedding tile
                + 6 * tb_ * tc_ * 4)     # f32 (tb, tc) intermediates
    while tc > 128 and vmem_est(tb, tc) > 44 * 2**20:
        tc = max(128, _round_up(tc // 2, 128))
    while tb > 8 and vmem_est(tb, tc) > 44 * 2**20:
        tb = max(8, _round_up(tb // 2, 8))

    b_pad = _round_up(B, tb)
    n_b = b_pad // tb
    n_c_total = _round_up(C, tc) // tc

    # v7x megacore: if the batch collapses to one tile (optimal for weight
    # traffic), split the class axis across the two TensorCores instead; each
    # split keeps its own partial LSE, combined below in the wrapper.
    n_s = 2 if (n_b == 1 and n_c_total >= 2) else 1
    c_pad = _round_up(C, tc * n_s)
    n_c = c_pad // (tc * n_s)
    classes_per_split = n_c * tc
    mask_pad = (c_pad != C)

    # ---- hoisted L2 normalization (f32 rsqrt), bf16 inputs for the MXU -------
    emb_n = jnp.pad(_l2_normalize(embeddings.astype(jnp.float32)),
                    ((0, b_pad - B), (0, 0))).astype(jnp.bfloat16)     # (b_pad, E)
    w_t = jnp.pad(_l2_normalize(weight.astype(jnp.float32)),
                  ((0, c_pad - C), (0, 0))).astype(jnp.bfloat16).T     # (E, c_pad)
    tgt2d = jnp.pad(targets.astype(jnp.int32).reshape(B, 1),
                    ((0, b_pad - B), (0, 0)))

    kernel = functools.partial(
        _arcface_kernel,
        s=float(s), cos_m=cos_m, sin_m=sin_m, th=th, mm=mm,
        easy_margin=bool(easy_margin), ls_eps=float(ls_eps),
        num_classes=C, tile_c=tc, classes_per_split=classes_per_split,
        mask_pad=mask_pad)

    n_sqrt = b_pad * c_pad if ls_eps > 0 else b_pad * n_s * n_c
    cost = pl.CostEstimate(
        flops=2 * b_pad * c_pad * E,
        transcendentals=b_pad * c_pad + n_sqrt,        # exp in streaming LSE + sqrt
        bytes_accessed=(2 * n_s * b_pad * E            # bf16 embeddings
                        + 2 * n_b * c_pad * E          # bf16 weight (per batch tile)
                        + 4 * b_pad                    # int32 targets
                        + 3 * 4 * n_s * b_pad))        # partial m / l / t outputs

    def emb_index_map(si, bi, ci):
        return (bi, 0)

    def w_index_map(si, bi, ci):
        return (0, si * n_c + ci)

    def tgt_index_map(si, bi, ci):
        return (bi, 0)

    def out_index_map(si, bi, ci):
        return (si * n_b + bi, 0)

    out_block = pl.BlockSpec((tb, 1), out_index_map)
    out_struct = jax.ShapeDtypeStruct((n_s * b_pad, 1), jnp.float32)

    m_p, l_p, t_p = pl.pallas_call(
        kernel,
        out_shape=(out_struct, out_struct, out_struct),
        grid_spec=pltpu.PrefetchScalarGridSpec(
            num_scalar_prefetch=0,
            grid=(n_s, n_b, n_c),
            in_specs=[
                pl.BlockSpec((tb, E), emb_index_map),   # normalized bf16 embeddings
                pl.BlockSpec((E, tc), w_index_map),     # normalized bf16 weight (E, C)
                pl.BlockSpec((tb, 1), tgt_index_map),   # int32 targets
            ],
            out_specs=(out_block, out_block, out_block),
        ),
        compiler_params=pltpu.CompilerParams(
            dimension_semantics=("parallel", "parallel", "arbitrary"),
            vmem_limit_bytes=64 * 1024 * 1024),
        cost_estimate=cost,
    )(emb_n, w_t, tgt2d)

    # ---- combine per-split partial LSEs / target logits, mean over true batch
    m_p = m_p.reshape(n_s, b_pad, 1)
    l_p = l_p.reshape(n_s, b_pad, 1)
    t_p = t_p.reshape(n_s, b_pad, 1)
    m_max = jnp.max(m_p, axis=0)                                   # (b_pad, 1)
    sum_exp = jnp.sum(l_p * jnp.exp(m_p - m_max), axis=0)
    lse = m_max + jnp.log(sum_exp)
    t_tot = jnp.sum(t_p, axis=0)
    per_row = (lse - t_tot)[:, 0]
    # padded batch rows carry finite garbage; they are sliced off here.
    return jnp.sum(per_row[:B]) / B


if __name__ == "__main__":
    batch = 8
    embedding_size = 32
    num_classes = 16

    key = jax.random.PRNGKey(0)
    k_emb, k_w, k_tgt = jax.random.split(key, 3)

    embeddings = jax.random.normal(k_emb, (batch, embedding_size), jnp.float32)
    stdv = 1.0 / math.sqrt(embedding_size)
    weight = jax.random.uniform(
        k_w, (num_classes, embedding_size), jnp.float32, -stdv, stdv)
    targets = jax.random.randint(k_tgt, (batch,), 0, num_classes, jnp.int32)

    # Pure-JAX reference (same bf16 matmul precision as the kernel).
    def ref(emb, w, tgt, *, s=30.0, m=0.5, ls_eps=0.0, easy_margin=False):
        en = _l2_normalize(emb.astype(jnp.float32))
        wn = _l2_normalize(w.astype(jnp.float32))
        cos = lax.dot_general(en.astype(jnp.bfloat16), wn.astype(jnp.bfloat16),
                              dimension_numbers=(((1,), (1,)), ((), ())),
                              preferred_element_type=jnp.float32)
        sin = jnp.sqrt(jnp.clip(1.0 - cos * cos, 0.0, 1.0))
        phi = cos * math.cos(m) - sin * math.sin(m)
        if easy_margin:
            phi = jnp.where(cos > 0.0, phi, cos)
        else:
            phi = jnp.where(cos > math.cos(math.pi - m), phi,
                            cos - math.sin(math.pi - m) * m)
        oh = jax.nn.one_hot(tgt, cos.shape[1], dtype=jnp.float32)
        if ls_eps > 0:
            oh = (1.0 - ls_eps) * oh + ls_eps / cos.shape[1]
        out = (oh * phi + (1.0 - oh) * cos) * s
        lse = jax.nn.logsumexp(out, axis=1)
        t_logit = jnp.take_along_axis(out, tgt[:, None], axis=1)[:, 0]
        return jnp.mean(lse - t_logit)

    # default config (ls_eps == 0 fast path, single batch / class tile)
    loss = arcface_loss(embeddings, weight, targets, s=30.0, m=0.5)
    jax.block_until_ready(loss)
    ref_loss = ref(embeddings, weight, targets, s=30.0, m=0.5)
    assert jnp.allclose(loss, ref_loss, rtol=5e-3, atol=5e-3), (loss, ref_loss)

    # label-smoothing path (full-block phi branch)
    loss2 = arcface_loss(embeddings, weight, targets, s=30.0, m=0.5, ls_eps=0.1)
    jax.block_until_ready(loss2)
    ref_loss2 = ref(embeddings, weight, targets, s=30.0, m=0.5, ls_eps=0.1)
    assert jnp.allclose(loss2, ref_loss2, rtol=5e-3, atol=5e-3), (loss2, ref_loss2)

    # streaming-LSE / class-split / padded-class path: C=200 with tile_c=128
    num_classes3 = 200
    k_w3, k_t3 = jax.random.split(jax.random.PRNGKey(1))
    weight3 = jax.random.uniform(
        k_w3, (num_classes3, embedding_size), jnp.float32, -stdv, stdv)
    targets3 = jax.random.randint(k_t3, (batch,), 0, num_classes3, jnp.int32)
    loss3 = arcface_loss(embeddings, weight3, targets3, s=30.0, m=0.5, tile_c=128)
    jax.block_until_ready(loss3)
    ref_loss3 = ref(embeddings, weight3, targets3, s=30.0, m=0.5)
    assert jnp.allclose(loss3, ref_loss3, rtol=5e-3, atol=5e-3), (loss3, ref_loss3)

    print("KERNEL_OK")
</pallas_src>

<mosaic_0001>
module attributes {stable_mosaic.version = 11 : i64} {
  func.func @_arcface_kernel(%arg0: i32, %arg1: i32, %arg2: i32, %arg3: memref<8x32xbf16, #tpu.memory_space<vmem>>, %arg4: memref<32x128xbf16, #tpu.memory_space<vmem>>, %arg5: memref<8x1xi32, #tpu.memory_space<vmem>>, %arg6: memref<8x1xf32, #tpu.memory_space<vmem>>, %arg7: memref<8x1xf32, #tpu.memory_space<vmem>>, %arg8: memref<8x1xf32, #tpu.memory_space<vmem>>) attributes {dimension_semantics = [#tpu.dimension_semantics<parallel>, #tpu.dimension_semantics<parallel>, #tpu.dimension_semantics<arbitrary>], iteration_bounds = array<i64: 1, 1, 1>, scalar_prefetch = 0 : i64, scratch_operands = 0 : i64, tpu.core_type = #tpu.core_type<tc>, window_params = [{transform_indices = @transform_0, window_bounds = array<i64: 8, 32>}, {transform_indices = @transform_1, window_bounds = array<i64: 32, 128>}, {transform_indices = @transform_2, window_bounds = array<i64: 8, 1>}, {transform_indices = @transform_3, window_bounds = array<i64: 8, 1>}, {transform_indices = @transform_4, window_bounds = array<i64: 8, 1>}, {transform_indices = @transform_5, window_bounds = array<i64: 8, 1>}]} {
    %c0_i32 = arith.constant 0 : i32
    %0 = arith.cmpi eq, %arg2, %c0_i32 : i32
    %1 = arith.extui %0 : i1 to i32
    %c0_i32_0 = arith.constant 0 : i32
    %2 = arith.cmpi ne, %1, %c0_i32_0 : i32
    scf.if %2 {
      %cst_34 = arith.constant -1.000000e+30 : f32
      %69 = vector.broadcast %cst_34 : f32 to vector<8x1xf32>
      %c0_35 = arith.constant 0 : index
      %c0_36 = arith.constant 0 : index
      %70 = vector.load %arg6[%c0_35, %c0_36] : memref<8x1xf32, #tpu.memory_space<vmem>>, vector<8x1xf32>
      tpu.vector_store %arg6[%c0_35, %c0_36], %69 {strides = array<i32>} : memref<8x1xf32, #tpu.memory_space<vmem>>, vector<8x1xf32>,
      %cst_37 = arith.constant 0.000000e+00 : f32
      %71 = vector.broadcast %cst_37 : f32 to vector<8x1xf32>
      %c0_38 = arith.constant 0 : index
      %c0_39 = arith.constant 0 : index
      %72 = vector.load %arg7[%c0_38, %c0_39] : memref<8x1xf32, #tpu.memory_space<vmem>>, vector<8x1xf32>
      tpu.vector_store %arg7[%c0_38, %c0_39], %71 {strides = array<i32>} : memref<8x1xf32, #tpu.memory_space<vmem>>, vector<8x1xf32>,
      %cst_40 = arith.constant 0.000000e+00 : f32
      %73 = vector.broadcast %cst_40 : f32 to vector<8x1xf32>
      %c0_41 = arith.constant 0 : index
      %c0_42 = arith.constant 0 : index
      %74 = vector.load %arg8[%c0_41, %c0_42] : memref<8x1xf32, #tpu.memory_space<vmem>>, vector<8x1xf32>
      tpu.vector_store %arg8[%c0_41, %c0_42], %73 {strides = array<i32>} : memref<8x1xf32, #tpu.memory_space<vmem>>, vector<8x1xf32>,
    } else {
    }
    %c0 = arith.constant 0 : index
    %c0_1 = arith.constant 0 : index
    %3 = vector.load %arg3[%c0, %c0_1] : memref<8x32xbf16, #tpu.memory_space<vmem>>, vector<8x32xbf16>
    %c0_2 = arith.constant 0 : index
    %c0_3 = arith.constant 0 : index
    %4 = vector.load %arg4[%c0_2, %c0_3] : memref<32x128xbf16, #tpu.memory_space<vmem>>, vector<32x128xbf16>
    %cst = arith.constant dense<0.000000e+00> : vector<8x128xf32>
    %5 = tpu.matmul %3, %4, %cst {dimension_numbers = #tpu.dot_dimension_numbers<[1], [0], [0], [1], [0, 0, 1, 1], [], []>} : vector<8x32xbf16>, vector<32x128xbf16>, vector<8x128xf32> -> vector<8x128xf32>
    %c0_4 = arith.constant 0 : index
    %c0_5 = arith.constant 0 : index
    %6 = vector.load %arg5[%c0_4, %c0_5] : memref<8x1xi32, #tpu.memory_space<vmem>>, vector<8x1xi32>
    %c128_i32 = arith.constant 128 : i32
    %7 = arith.muli %arg0, %c128_i32 : i32
    %c128_i32_6 = arith.constant 128 : i32
    %8 = arith.muli %arg2, %c128_i32_6 : i32
    %9 = arith.addi %7, %8 : i32
    %10 = tpu.iota {dimensions = array<i32: 1>} : vector<8x128xi32>
    %11 = vector.broadcast %9 : i32 to vector<8x128xi32>
    %12 = arith.addi %10, %11 : vector<8x128xi32>
    %13 = vector.broadcast %6 : vector<8x1xi32> to vector<8x128xi32>
    %14 = arith.cmpi eq, %12, %13 : vector<8x128xi32>
    %cst_7 = arith.constant 0.000000e+00 : f32
    %15 = vector.broadcast %cst_7 : f32 to vector<8x128xf32>
    %16 = arith.select %14, %5, %15 : vector<8x128xi1>, vector<8x128xf32>
    %cst_8 = arith.constant dense<0.000000e+00> : vector<8xf32>
    %17 = vector.multi_reduction <add>, %16, %cst_8 [1] : vector<8x128xf32> to vector<8xf32>
    %18 = vector.shape_cast %17 : vector<8xf32> to vector<8x1xf32>
    %19 = arith.mulf %18, %18 : vector<8x1xf32>
    %cst_9 = arith.constant 1.000000e+00 : f32
    %20 = vector.broadcast %cst_9 : f32 to vector<8x1xf32>
    %21 = arith.subf %20, %19 : vector<8x1xf32>
    %cst_10 = arith.constant 0.000000e+00 : f32
    %cst_11 = arith.constant 1.000000e+00 : f32
    %22 = vector.broadcast %cst_10 : f32 to vector<8x1xf32>
    %23 = arith.maximumf %22, %21 : vector<8x1xf32>
    %24 = vector.broadcast %cst_11 : f32 to vector<8x1xf32>
    %25 = arith.minimumf %24, %23 : vector<8x1xf32>
    %26 = math.sqrt %25 : vector<8x1xf32>
    %cst_12 = arith.constant 0.87758255 : f32
    %27 = vector.broadcast %cst_12 : f32 to vector<8x1xf32>
    %28 = arith.mulf %18, %27 : vector<8x1xf32>
    %cst_13 = arith.constant 0.47942555 : f32
    %29 = vector.broadcast %cst_13 : f32 to vector<8x1xf32>
    %30 = arith.mulf %26, %29 : vector<8x1xf32>
    %31 = arith.subf %28, %30 : vector<8x1xf32>
    %cst_14 = arith.constant -0.87758255 : f32
    %32 = vector.broadcast %cst_14 : f32 to vector<8x1xf32>
    %33 = arith.cmpf ogt, %18, %32 : vector<8x1xf32>
    %cst_15 = arith.constant 0.239712775 : f32
    %34 = vector.broadcast %cst_15 : f32 to vector<8x1xf32>
    %35 = arith.subf %18, %34 : vector<8x1xf32>
    %36 = arith.select %33, %31, %35 : vector<8x1xi1>, vector<8x1xf32>
    %37 = vector.shape_cast %36 : vector<8x1xf32> to vector<8x1xf32>
    %38 = vector.broadcast %37 : vector<8x1xf32> to vector<8x128xf32>
    %39 = arith.select %14, %38, %5 : vector<8x128xi1>, vector<8x128xf32>
    %cst_16 = arith.constant 3.000000e+01 : f32
    %40 = vector.broadcast %cst_16 : f32 to vector<8x128xf32>
    %41 = arith.mulf %40, %39 : vector<8x128xf32>
    %c0_17 = arith.constant 0 : index
    %c0_18 = arith.constant 0 : index
    %42 = vector.load %arg8[%c0_17, %c0_18] : memref<8x1xf32, #tpu.memory_space<vmem>>, vector<8x1xf32>
    %cst_19 = arith.constant 0.000000e+00 : f32
    %43 = vector.broadcast %cst_19 : f32 to vector<8x128xf32>
    %44 = arith.select %14, %41, %43 : vector<8x128xi1>, vector<8x128xf32>
    %cst_20 = arith.constant dense<0.000000e+00> : vector<8xf32>
    %45 = vector.multi_reduction <add>, %44, %cst_20 [1] : vector<8x128xf32> to vector<8xf32>
    %46 = vector.shape_cast %45 : vector<8xf32> to vector<8x1xf32>
    %47 = arith.addf %42, %46 : vector<8x1xf32>
    %c0_21 = arith.constant 0 : index
    %c0_22 = arith.constant 0 : index
    %48 = vector.load %arg8[%c0_21, %c0_22] : memref<8x1xf32, #tpu.memory_space<vmem>>, vector<8x1xf32>
    tpu.vector_store %arg8[%c0_21, %c0_22], %47 {strides = array<i32>} : memref<8x1xf32, #tpu.memory_space<vmem>>, vector<8x1xf32>,
    %c16_i32 = arith.constant 16 : i32
    %49 = vector.broadcast %c16_i32 : i32 to vector<8x128xi32>
    %50 = arith.cmpi slt, %12, %49 : vector<8x128xi32>
    %cst_23 = arith.constant -1.000000e+30 : f32
    %51 = vector.broadcast %cst_23 : f32 to vector<8x128xf32>
    %52 = arith.select %50, %41, %51 : vector<8x128xi1>, vector<8x128xf32>
    %c0_24 = arith.constant 0 : index
    %c0_25 = arith.constant 0 : index
    %53 = vector.load %arg6[%c0_24, %c0_25] : memref<8x1xf32, #tpu.memory_space<vmem>>, vector<8x1xf32>
    %cst_26 = arith.constant dense<0xFF800000> : vector<8xf32>
    %54 = vector.multi_reduction <maximumf>, %52, %cst_26 [1] : vector<8x128xf32> to vector<8xf32>
    %55 = vector.shape_cast %54 : vector<8xf32> to vector<8x1xf32>
    %56 = arith.maximumf %53, %55 : vector<8x1xf32>
    %c0_27 = arith.constant 0 : index
    %c0_28 = arith.constant 0 : index
    %57 = vector.load %arg7[%c0_27, %c0_28] : memref<8x1xf32, #tpu.memory_space<vmem>>, vector<8x1xf32>
    %58 = arith.subf %53, %56 : vector<8x1xf32>
    %59 = math.exp %58 : vector<8x1xf32>
    %60 = arith.mulf %57, %59 : vector<8x1xf32>
    %61 = vector.broadcast %56 : vector<8x1xf32> to vector<8x128xf32>
    %62 = arith.subf %52, %61 : vector<8x128xf32>
    %63 = math.exp %62 : vector<8x128xf32>
    %cst_29 = arith.constant dense<0.000000e+00> : vector<8xf32>
    %64 = vector.multi_reduction <add>, %63, %cst_29 [1] : vector<8x128xf32> to vector<8xf32>
    %65 = vector.shape_cast %64 : vector<8xf32> to vector<8x1xf32>
    %66 = arith.addf %60, %65 : vector<8x1xf32>
    %c0_30 = arith.constant 0 : index
    %c0_31 = arith.constant 0 : index
    %67 = vector.load %arg7[%c0_30, %c0_31] : memref<8x1xf32, #tpu.memory_space<vmem>>, vector<8x1xf32>
    tpu.vector_store %arg7[%c0_30, %c0_31], %66 {strides = array<i32>} : memref<8x1xf32, #tpu.memory_space<vmem>>, vector<8x1xf32>,
    %c0_32 = arith.constant 0 : index
    %c0_33 = arith.constant 0 : index
    %68 = vector.load %arg6[%c0_32, %c0_33] : memref<8x1xf32, #tpu.memory_space<vmem>>, vector<8x1xf32>
    tpu.vector_store %arg6[%c0_32, %c0_33], %56 {strides = array<i32>} : memref<8x1xf32, #tpu.memory_space<vmem>>, vector<8x1xf32>,
    return
  }
  func.func @transform_0(%arg0: i32, %arg1: i32, %arg2: i32) -> (i32, i32) {
    %c0_i32 = arith.constant 0 : i32
    %c0_i32_0 = arith.constant 0 : i32
    return %arg1, %c0_i32 : i32, i32
  }
  func.func @transform_1(%arg0: i32, %arg1: i32, %arg2: i32) -> (i32, i32) {
    %c1_i32 = arith.constant 1 : i32
    %0 = arith.muli %arg0, %c1_i32 : i32
    %1 = arith.addi %0, %arg2 : i32
    %c0_i32 = arith.constant 0 : i32
    %c0_i32_0 = arith.constant 0 : i32
    return %c0_i32, %1 : i32, i32
  }
  func.func @transform_2(%arg0: i32, %arg1: i32, %arg2: i32) -> (i32, i32) {
    %c0_i32 = arith.constant 0 : i32
    %c0_i32_0 = arith.constant 0 : i32
    return %arg1, %c0_i32 : i32, i32
  }
  func.func @transform_3(%arg0: i32, %arg1: i32, %arg2: i32) -> (i32, i32) {
    %c1_i32 = arith.constant 1 : i32
    %0 = arith.muli %arg0, %c1_i32 : i32
    %1 = arith.addi %0, %arg1 : i32
    %c0_i32 = arith.constant 0 : i32
    %c0_i32_0 = arith.constant 0 : i32
    return %1, %c0_i32 : i32, i32
  }
  func.func @transform_4(%arg0: i32, %arg1: i32, %arg2: i32) -> (i32, i32) {
    %c1_i32 = arith.constant 1 : i32
    %0 = arith.muli %arg0, %c1_i32 : i32
    %1 = arith.addi %0, %arg1 : i32
    %c0_i32 = arith.constant 0 : i32
    %c0_i32_0 = arith.constant 0 : i32
    return %1, %c0_i32 : i32, i32
  }
  func.func @transform_5(%arg0: i32, %arg1: i32, %arg2: i32) -> (i32, i32) {
    %c1_i32 = arith.constant 1 : i32
    %0 = arith.muli %arg0, %c1_i32 : i32
    %1 = arith.addi %0, %arg1 : i32
    %c0_i32 = arith.constant 0 : i32
    %c0_i32_0 = arith.constant 0 : i32
    return %1, %c0_i32 : i32, i32
  }
}

</mosaic_0001>

<bundles_post_ra>
// kernel: tpu_custom_call.1
= control target key start
LH: loop header
LB: loop body
LE: loop exit
PB: predicated region body
PF: predicated region fallthrough
CT: control target
= control target key end

     0   :  { %11 = vsyncpa [#allocation3], 0  ;;  %s305_s21 = smov [#allocation2]   ;;  %s306_s23 = smov 64   ;;  %s386_s0 = inlined_call_operand.vmem [shape: bf16[8,32], index: 0, kind: input, shape index: {}]   ;;  %s387_s1 = inlined_call_operand.hbm [shape: bf16[32,128], index: 1, kind: input, shape index: {}]   ;;  %s388_s2 = inlined_call_operand.vmem [shape: s32[8,1], index: 2, kind: input, shape index: {}]   ;;  %s389_s3 = inlined_call_operand.vmem [shape: f32[8,1], index: 3, kind: output, shape index: {0}]   ;;  %s390_s4 = inlined_call_operand.vmem [shape: f32[8,1], index: 4, kind: output, shape index: {1}]   ;;  %s391_s5 = inlined_call_operand.vmem [shape: f32[8,1], index: 5, kind: output, shape index: {2}]  }
   0x1   :  { %s21_s20 = sshll.u32 %s387_s1, 4  ;;  %s23_s22 = sshll.u32 %s305_s21, 4  ;;  %s22_s20 = int_to_ptr.hbm [resolvable:$true] %s21_s20  ;;  %s24_s22 = int_to_ptr.vmem [resolvable:$true] %s23_s22 }
   0x2   :  { %s307_s24 = smov 4  }
   0x3   :  { %29 = dma.hbm_to_vmem [thread:$0]  %s22_s20, 256, %s24_s22, [#allocation3], %s306_s23, %s306_s23, %s307_s24  }
   0x4   :  { %303 = dma.done.wait [#allocation3], 256  }
   0x5   :  { %304 = vsyncadd [#allocation3], 4294967040  ;;  %v308_v0 = vmov 0   ;;  %v264_v1 = vld [vmem:[#allocation2 + $0x8] sm:$0xff]  ;;  %v113_v2 = vld [vmem:[%s388_s2] sm:$0xff]  ;;  %vm96_vm0 = vcmask 261120   ;;  %v117_v5 = vlaneseq }
   0x6   :  { %271 = vset.pattern.permute.xlu0 %v308_v0  ;;  %272 = vset.pattern.permute.xlu1 %v308_v0  ;;  %v263_v3 = vld [vmem:[#allocation2] sm:$0xff]  ;;  %vm75_vm2 = vcmask 7168   ;;  %v309_v16 = vmov -1e+30   ;;  %v310_v36 = vmov 0.0  }
   0x7   :  { %106 = vmatpush.bf16.msra.mxu0 %v264_v1  ;;  %122 = vperm.xlu0 %271, %v113_v2   ;;  %v79_v4 = vld [vmem:[%s386_s0] sm:$0xf]  ;;  %v118_v6 = vand.u32 127, %v117_v5  ;;  %76 = vst.msk [vmem:[%s389_s3] sm:$0xff] %vm75_vm2, %v309_v16 }
   0x8   :  { %78 = vst.msk [vmem:[%s391_s5] sm:$0xff] %vm75_vm2, %v310_v36 }
   0x9   :  { %vm159_vm6 = vcmp.lt.s32.totalorder %v118_v6, 16  ;;  %77 = vst.msk [vmem:[%s390_s4] sm:$0xff] %vm75_vm2, %v310_v36 }
   0xb   :  { %107 = vmatpush.bf16.msra.mxu0 %v263_v3 }
   0xe   :  { %261 = vmatmul.msk.bf16.vlgmr.msra.gmra.mxu0 %vm96_vm0, %v79_v4  ;;  %v161_v37 = vld [vmem:[%s389_s3] sm:$0xff] }
   0xf   :  { %v152_v38 = vld [vmem:[%s391_s5] sm:$0xff] }
  0x10   :  { %v165_v50 = vld [vmem:[%s390_s4] sm:$0xff] }
  0x79   :  { %v123_v7 = vpop.permute.xlu0 %122 }
  0x7a   :  { %vm124_vm1 = vcmp.eq.s32.totalorder %v118_v6, %v123_v7 }
  0x8b   :  { %v109_v8 = vpop.f32.mrf.mxu0 }
  0x8c   :  { %v125_v9 = vsel %vm124_vm1, %v109_v8, 0.0 }
  0x8d   :  { %126 = vadd.xlane.f32.xlu0 %v125_v9 }
  0x93   :  { %v111_v10 = vpop.f32.mrf.mxu0 }
 0x100   :  { %v127_v11 = vpop.xlane.xlu0 %126 }
 0x101   :  { %v128_v12 = vmul.f32 %v127_v11, %v127_v11  ;;  %v144_v27 = vmul.f32 0.87758255, %v127_v11  ;;  %v262_v30 = vadd.f32 -0.23971277, %v127_v11  ;;  %vm147_vm5 = vcmp.gt.f32.partialorder %v127_v11, -0.87758255 }
 0x103   :  { %v129_v13 = vsub.f32 1.0, %v128_v12 }
 0x105   :  { %v130_v14 = vmax.f32 %v129_v13, 0.0 }
 0x107   :  { %v131_v15 = vmin.f32 %v130_v14, 1.0 }
 0x109   :  { %273 = vrsqrt.f32 %v131_v15  ;;  %vm139_vm3 = vcmp.eq.f32.partialorder %v131_v15, inf  ;;  %v142_v24 = vand.u32 2147483648, %v131_v15  ;;  %vm141_vm4 = vcmp.eq.f32.partialorder %v131_v15, 0.0 }
 0x10f   :  { %v274_v17 = vpop.eup %273 }
 0x110   :  { %v133_v18 = vmul.f32 %v274_v17, %v131_v15 }
 0x112   :  { %v134_v19 = vmul.f32 %v274_v17, %v133_v18 }
 0x114   :  { %v135_v20 = vmul.f32 0.5, %v134_v19 }
 0x116   :  { %v136_v21 = vsub.f32 1.5, %v135_v20 }
 0x118   :  { %v137_v22 = vmul.f32 %v274_v17, %v136_v21 }
 0x11a   :  { %v138_v23 = vmul.f32 %v137_v22, %v131_v15 }
 0x11c   :  { %v140_v25 = vsel %vm139_vm3, %v131_v15, %v138_v23 }
 0x11d   :  { %v143_v26 = vsel %vm141_vm4, %v142_v24, %v140_v25 }
 0x11e   :  { %v145_v28 = vmul.f32 0.47942555, %v143_v26 }
 0x120   :  { %v146_v29 = vsub.f32 %v144_v27, %v145_v28 }
 0x122   :  { %v149_v31 = vsel %vm147_vm5, %v146_v29, %v262_v30 }
 0x123   :  { %v150_v32 = vsel %vm124_vm1, %v149_v31, %v109_v8 }
 0x124   :  { %v151_v33 = vmul.f32 30.0, %v150_v32 }
 0x126   :  { %v160_v34 = vsel %vm159_vm6, %v151_v33, -1e+30  ;;  %v153_v35 = vsel %vm124_vm1, %v151_v33, 0.0 }
 0x127   :  { %162 = vmax.xlane.f32.xlu1 %v160_v34  ;;  %154 = vadd.xlane.f32.xlu2 %v153_v35 }
 0x19a   :  { %v163_v39 = vpop.xlane.xlu1 %162  ;;  %v155_v40 = vpop.xlane.xlu2 %154 }
 0x19b   :  { %v164_v41 = vmax.f32 %v161_v37, %v163_v39  ;;  %v156_v42 = vadd.f32 %v155_v40, %v152_v38 }
 0x19d   :  { %v166_v43 = vsub.f32 %v161_v37, %v164_v41  ;;  %182 = vst.msk [vmem:[%s389_s3] sm:$0xff] %vm75_vm2, %v164_v41  ;;  %172 = vperm.xlu1 %272, %v164_v41  }
 0x19e   :  { %158 = vst.msk [vmem:[%s391_s5] sm:$0xff] %vm75_vm2, %v156_v42 }
 0x19f   :  { %v167_v48 = vmul.f32 1.442695, %v166_v43 }
 0x20f   :  { %v173_v44 = vpop.permute.xlu1 %172 }
 0x210   :  { %v175_v45 = vsub.f32 %v160_v34, %v173_v44 }
 0x212   :  { %v176_v46 = vmul.f32 1.442695, %v175_v45 }
 0x214   :  { %275 = vpow2.f32 %v176_v46 }
 0x215   :  { %277 = vpow2.f32 %v167_v48 }
 0x21a   :  { %v276_v47 = vpop.eup %275 }
 0x21b   :  { %178 = vadd.xlane.f32.xlu2 %v276_v47  ;;  %v278_v49 = vpop.eup %277 }
 0x21c   :  { %v169_v51 = vmul.f32 %v278_v49, %v165_v50 }
 0x28e   :  { %v179_v52 = vpop.xlane.xlu2 %178 }
 0x28f   :  { %v180_v53 = vadd.f32 %v179_v52, %v169_v51 }
 0x291   :  { %181 = vst.msk [vmem:[%s390_s4] sm:$0xff] %vm75_vm2, %v180_v53 }
 0x292   :  { %228 = vsyncpa [#allocation3], 1 }

</bundles_post_ra>
